<compile_context>
chip_gen: v7x
topology: tpu7x:2x2x1
jax: 0.10.0
libtpu: 0.0.40
codegen_flags: <defaults>
</compile_context>

<pallas_src>
import functools

import jax
import jax.numpy as jnp
from jax import lax
from jax.experimental import pallas as pl
from jax.experimental.pallas import tpu as pltpu


# ----------------------------------------------------------------------------
# Mask / degree construction (identical semantics to nflows/liesvf MaskedLinear)
# ----------------------------------------------------------------------------
def _get_input_degrees(in_features: int) -> jnp.ndarray:
    return jnp.arange(1, in_features + 1, dtype=jnp.int32)


def _hidden_mask_and_degrees(in_degrees, out_features, autoregressive_features):
    # sequential (non-random) mask, is_output=False
    max_ = max(1, autoregressive_features - 1)
    min_ = min(1, autoregressive_features - 1)
    out_degrees = jnp.arange(out_features, dtype=jnp.int32) % max_ + min_
    mask = (out_degrees[:, None] >= in_degrees[None, :]).astype(jnp.float32)
    return mask, out_degrees  # mask: [out_features, in_features]


def _output_mask_and_degrees(in_degrees, out_features, autoregressive_features):
    # is_output=True
    reps = out_features // autoregressive_features
    out_degrees = jnp.tile(_get_input_degrees(autoregressive_features), reps)
    mask = (out_degrees[:, None] > in_degrees[None, :]).astype(jnp.float32)
    return mask, out_degrees  # mask: [out_features, in_features]


def _round_up(n: int, m: int) -> int:
    return ((n + m - 1) // m) * m


# ----------------------------------------------------------------------------
# One-time parameter preparation (masking hoisted out of the forward)
# ----------------------------------------------------------------------------
def prepare_softmade_params(w1, b1, mask1, w2, b2, mask2):
    """w1:[H,F], b1:[H], w2:[O,H], b2:[O] -> pre-masked, kernel-layout params.

    The kernel computes with batch on the lane axis, so the weights are used in their
    native [out_features, in_features] orientation and the biases become columns.
    """
    w1m = jnp.asarray(w1 * mask1)          # [H, F]
    w2m = jnp.asarray(w2 * mask2)          # [O, H]
    b1col = jnp.asarray(b1)[:, None]       # [H, 1]
    b2col = jnp.asarray(b2)[:, None]       # [O, 1]
    return w1m, b1col, w2m, b2col


# ----------------------------------------------------------------------------
# Pallas kernel: masked-linear -> softmax(-h^2) -> masked-linear, per batch tile.
# All math is batch-on-lanes: features on sublanes, TM-sample batch tile on lanes.
# ----------------------------------------------------------------------------
# NT contraction (contract the last dim of both operands), as used by splash attention.
_NT_DIMS = (((1,), (1,)), ((), ()))


def _softmade_kernel(x_ref, w1_ref, b1_ref, w2_ref, b2_ref, o_ref):
    # x_ref: (TM, F) natural-layout tile (dense HBM slab).  The relayout to
    # batch-on-lanes happens inside the NT matmul, on MXU/XLU slack.
    h_t = lax.dot_general(w1_ref[...], x_ref[...], _NT_DIMS,
                          preferred_element_type=jnp.float32)          # [H, TM]
    h_t = h_t + b1_ref[...]                                            # [H,1] lane bcast
    z = -(h_t * h_t)                                                   # [H, TM]
    z_max = jnp.max(z, axis=0, keepdims=True)                          # [1, TM] sublane reduce
    e = jnp.exp(z - z_max)                                             # [H, TM]  (EUP)
    denom = jnp.sum(e, axis=0, keepdims=True)                          # [1, TM]
    # Softmax normalization commutes through the linear output layer.
    acc = jnp.dot(w2_ref[...], e, preferred_element_type=jnp.float32)  # [O, TM]
    out = acc / denom + b2_ref[...]        # exact divide (approx recip err > tolerance)
    o_ref[...] = out.astype(o_ref.dtype)   # lane-dense store: last dim is the batch tile


def _pallas_softmade(x_padded, w1m, b1col, w2m, b2col, tm):
    Bp, F = x_padded.shape
    H = w1m.shape[0]
    O = w2m.shape[0]
    grid = (pl.cdiv(Bp, tm),)

    cost = pl.CostEstimate(
        flops=2 * Bp * (F * H + H * O),
        transcendentals=Bp * H,                                   # exp
        bytes_accessed=4 * (Bp * F + Bp * O + F * H + H + O * H + O),
    )

    return pl.pallas_call(
        _softmade_kernel,
        out_shape=jax.ShapeDtypeStruct((O, Bp), x_padded.dtype),  # batch on lanes
        grid=grid,
        in_specs=[
            pl.BlockSpec((tm, F), lambda i: (i, 0)),   # x tile, pipelined
            pl.BlockSpec((H, F), lambda i: (0, 0)),    # resident masked W1
            pl.BlockSpec((H, 1), lambda i: (0, 0)),    # resident b1 column
            pl.BlockSpec((O, H), lambda i: (0, 0)),    # resident masked W2
            pl.BlockSpec((O, 1), lambda i: (0, 0)),    # resident b2 column
        ],
        out_specs=pl.BlockSpec((O, tm), lambda i: (0, i)),        # lane-dense output tile
        compiler_params=pltpu.CompilerParams(
            dimension_semantics=("parallel",),   # shard batch tiles over TCs (v7x megacore)
            vmem_limit_bytes=48 * 1024 * 1024,   # v7x-safe (64 MiB phys); v5e/v6e could go
        ),                                       # higher only if sweeping block_m >> 16K
        cost_estimate=cost,
    )(x_padded, w1m, b1col, w2m, b2col)


def _pick_tile(Bp: int, block_m: int) -> int:
    """Batch tile: as big as block_m (amortize ~0.35 us/grid-step overhead), always a
    multiple of 128 (batch is the lane axis), capped so the grid keeps >= ~16 steps
    when the batch is large enough (keeps both v7x TensorCores fed, pipeline warm)."""
    block_m = _round_up(max(block_m, 128), 128)
    step_cap = max(128, _round_up(pl.cdiv(Bp, 16), 128))
    return min(block_m, step_cap, Bp)


@functools.partial(jax.jit, static_argnames=("block_m",))
def softmade_forward_lane_major(x, w1m, b1col, w2m, b2col, *, block_m=8192):
    """x: [B, F] -> out: [O, round_up(B, 128)] with batch on the minor (lane) axis.

    Fast path with no output transpose.  Columns >= B (present only when B is not a
    multiple of 128) are padding and must be ignored by the caller.
    """
    B, _ = x.shape
    Bp = _round_up(B, 128)
    if Bp != B:                       # ragged batch only; no copy in the common case
        x = jnp.pad(x, ((0, Bp - B), (0, 0)))
    tm = _pick_tile(Bp, block_m)
    return _pallas_softmade(x, w1m, b1col, w2m, b2col, tm)


@functools.partial(jax.jit, static_argnames=("block_m",))
def softmade_forward(x, w1m, b1col, w2m, b2col, *, block_m=8192):
    """Module-compatible forward: x [B, F] -> out [B, O].

    The final transpose back to batch-major is a boundary HBM copy; pipelines that can
    consume the lane-major layout should call softmade_forward_lane_major instead.
    """
    B = x.shape[0]
    out_t = softmade_forward_lane_major(x, w1m, b1col, w2m, b2col, block_m=block_m)
    return out_t[:, :B].T


# ----------------------------------------------------------------------------
# Pure-JAX reference for verification
# ----------------------------------------------------------------------------
def softmade_reference(x, w1, b1, mask1, w2, b2, mask2):
    h = x @ (w1 * mask1).T + b1
    s = jax.nn.softmax(-(h ** 2), axis=1)
    return s @ (w2 * mask2).T + b2


if __name__ == "__main__":
    # Module hyper-parameters (from SoftMADE.__init__ shapes)
    features = 8
    hidden_features = 32
    output_multiplier = 2
    out_features = features * output_multiplier
    batch = 520   # deliberately NOT a multiple of 128: exercises the ragged-batch path

    key = jax.random.PRNGKey(0)
    kx, kw1, kb1, kw2, kb2 = jax.random.split(key, 5)

    # Deterministic synthetic parameters. NOTE: the original __init__ zeroes the
    # weights (nn.init.zeros_); we use small random values so the kernel path is
    # exercised non-trivially — forward semantics are unchanged.
    x = jax.random.normal(kx, (batch, features), dtype=jnp.float32)
    w1 = 0.1 * jax.random.normal(kw1, (hidden_features, features), dtype=jnp.float32)
    b1 = 0.1 * jax.random.normal(kb1, (hidden_features,), dtype=jnp.float32)
    w2 = 0.1 * jax.random.normal(kw2, (out_features, hidden_features), dtype=jnp.float32)
    b2 = 0.1 * jax.random.normal(kb2, (out_features,), dtype=jnp.float32)

    in_deg = _get_input_degrees(features)
    mask1, hidden_deg = _hidden_mask_and_degrees(in_deg, hidden_features, features)
    mask2, _ = _output_mask_and_degrees(hidden_deg, out_features, features)

    # One-time parameter prep (masking hoisted out of the forward).
    w1m, b1col, w2m, b2col = prepare_softmade_params(w1, b1, mask1, w2, b2, mask2)

    # Default (large) block_m; the tile heuristic shrinks it for this tiny demo batch.
    out = softmade_forward(x, w1m, b1col, w2m, b2col)
    jax.block_until_ready(out)

    ref = softmade_reference(x, w1, b1, mask1, w2, b2, mask2)
    assert out.shape == (batch, out_features)
    assert jnp.allclose(out, ref, atol=1e-4, rtol=1e-4), "mismatch vs reference"

    print("KERNEL_OK")
</pallas_src>

<mosaic_0001>
module attributes {stable_mosaic.version = 11 : i64} {
  func.func @_softmade_kernel(%arg0: i32, %arg1: memref<128x8xf32, #tpu.memory_space<vmem>>, %arg2: memref<32x8xf32, #tpu.memory_space<vmem>>, %arg3: memref<32x1xf32, #tpu.memory_space<vmem>>, %arg4: memref<16x32xf32, #tpu.memory_space<vmem>>, %arg5: memref<16x1xf32, #tpu.memory_space<vmem>>, %arg6: memref<16x128xf32, #tpu.memory_space<vmem>>) attributes {dimension_semantics = [#tpu.dimension_semantics<parallel>], iteration_bounds = array<i64: 5>, scalar_prefetch = 0 : i64, scratch_operands = 0 : i64, tpu.core_type = #tpu.core_type<tc>, window_params = [{transform_indices = @transform_0, window_bounds = array<i64: 128, 8>}, {pipeline_mode = #tpu.pipeline_mode<synchronous>, transform_indices = @transform_1, window_bounds = array<i64: 32, 8>}, {pipeline_mode = #tpu.pipeline_mode<synchronous>, transform_indices = @transform_2, window_bounds = array<i64: 32, 1>}, {pipeline_mode = #tpu.pipeline_mode<synchronous>, transform_indices = @transform_3, window_bounds = array<i64: 16, 32>}, {pipeline_mode = #tpu.pipeline_mode<synchronous>, transform_indices = @transform_4, window_bounds = array<i64: 16, 1>}, {transform_indices = @transform_5, window_bounds = array<i64: 16, 128>}]} {
    %c0 = arith.constant 0 : index
    %c0_0 = arith.constant 0 : index
    %0 = vector.load %arg2[%c0, %c0_0] : memref<32x8xf32, #tpu.memory_space<vmem>>, vector<32x8xf32>
    %c0_1 = arith.constant 0 : index
    %c0_2 = arith.constant 0 : index
    %1 = vector.load %arg1[%c0_1, %c0_2] : memref<128x8xf32, #tpu.memory_space<vmem>>, vector<128x8xf32>
    %cst = arith.constant dense<0.000000e+00> : vector<32x128xf32>
    %2 = tpu.matmul %0, %1, %cst {dimension_numbers = #tpu.dot_dimension_numbers<[1], [1], [0], [0], [0, 0, 1, 0], [], []>} : vector<32x8xf32>, vector<128x8xf32>, vector<32x128xf32> -> vector<32x128xf32>
    %c0_3 = arith.constant 0 : index
    %c0_4 = arith.constant 0 : index
    %3 = vector.load %arg3[%c0_3, %c0_4] : memref<32x1xf32, #tpu.memory_space<vmem>>, vector<32x1xf32>
    %4 = vector.broadcast %3 : vector<32x1xf32> to vector<32x128xf32>
    %5 = arith.addf %2, %4 : vector<32x128xf32>
    %6 = arith.mulf %5, %5 : vector<32x128xf32>
    %cst_5 = arith.constant 0.000000e+00 : f32
    %7 = vector.broadcast %cst_5 : f32 to vector<32x128xf32>
    %8 = arith.subf %7, %6 : vector<32x128xf32>
    %cst_6 = arith.constant dense<0xFF800000> : vector<128xf32>
    %9 = vector.multi_reduction <maximumf>, %8, %cst_6 [0] : vector<32x128xf32> to vector<128xf32>
    %10 = vector.shape_cast %9 : vector<128xf32> to vector<1x128xf32>
    %11 = vector.broadcast %10 : vector<1x128xf32> to vector<32x128xf32>
    %12 = arith.subf %8, %11 : vector<32x128xf32>
    %13 = math.exp %12 : vector<32x128xf32>
    %cst_7 = arith.constant dense<0.000000e+00> : vector<128xf32>
    %14 = vector.multi_reduction <add>, %13, %cst_7 [0] : vector<32x128xf32> to vector<128xf32>
    %15 = vector.shape_cast %14 : vector<128xf32> to vector<1x128xf32>
    %c0_8 = arith.constant 0 : index
    %c0_9 = arith.constant 0 : index
    %16 = vector.load %arg4[%c0_8, %c0_9] : memref<16x32xf32, #tpu.memory_space<vmem>>, vector<16x32xf32>
    %cst_10 = arith.constant dense<0.000000e+00> : vector<16x128xf32>
    %17 = tpu.matmul %16, %13, %cst_10 {dimension_numbers = #tpu.dot_dimension_numbers<[1], [0], [0], [1], [0, 0, 1, 1], [], []>} : vector<16x32xf32>, vector<32x128xf32>, vector<16x128xf32> -> vector<16x128xf32>
    %18 = vector.broadcast %15 : vector<1x128xf32> to vector<16x128xf32>
    %19 = arith.divf %17, %18 : vector<16x128xf32>
    %c0_11 = arith.constant 0 : index
    %c0_12 = arith.constant 0 : index
    %20 = vector.load %arg5[%c0_11, %c0_12] : memref<16x1xf32, #tpu.memory_space<vmem>>, vector<16x1xf32>
    %21 = vector.broadcast %20 : vector<16x1xf32> to vector<16x128xf32>
    %22 = arith.addf %19, %21 : vector<16x128xf32>
    %c0_13 = arith.constant 0 : index
    %c0_14 = arith.constant 0 : index
    %23 = vector.load %arg6[%c0_13, %c0_14] : memref<16x128xf32, #tpu.memory_space<vmem>>, vector<16x128xf32>
    tpu.vector_store %arg6[%c0_13, %c0_14], %22 {strides = array<i32>} : memref<16x128xf32, #tpu.memory_space<vmem>>, vector<16x128xf32>,
    return
  }
  func.func @transform_0(%arg0: i32) -> (i32, i32) {
    %c0_i32 = arith.constant 0 : i32
    %c0_i32_0 = arith.constant 0 : i32
    return %arg0, %c0_i32 : i32, i32
  }
  func.func @transform_1(%arg0: i32) -> (i32, i32) {
    %c0_i32 = arith.constant 0 : i32
    %c0_i32_0 = arith.constant 0 : i32
    %c0_i32_1 = arith.constant 0 : i32
    return %c0_i32, %c0_i32_0 : i32, i32
  }
  func.func @transform_2(%arg0: i32) -> (i32, i32) {
    %c0_i32 = arith.constant 0 : i32
    %c0_i32_0 = arith.constant 0 : i32
    %c0_i32_1 = arith.constant 0 : i32
    return %c0_i32, %c0_i32_0 : i32, i32
  }
  func.func @transform_3(%arg0: i32) -> (i32, i32) {
    %c0_i32 = arith.constant 0 : i32
    %c0_i32_0 = arith.constant 0 : i32
    %c0_i32_1 = arith.constant 0 : i32
    return %c0_i32, %c0_i32_0 : i32, i32
  }
  func.func @transform_4(%arg0: i32) -> (i32, i32) {
    %c0_i32 = arith.constant 0 : i32
    %c0_i32_0 = arith.constant 0 : i32
    %c0_i32_1 = arith.constant 0 : i32
    return %c0_i32, %c0_i32_0 : i32, i32
  }
  func.func @transform_5(%arg0: i32) -> (i32, i32) {
    %c0_i32 = arith.constant 0 : i32
    %c0_i32_0 = arith.constant 0 : i32
    return %c0_i32, %arg0 : i32, i32
  }
}

</mosaic_0001>

<bundles_post_ra>
// kernel: softmade_forward_lane_major.1
= control target key start
LH: loop header
LB: loop body
LE: loop exit
PB: predicated region body
PF: predicated region fallthrough
CT: control target
= control target key end

     0   :  { %10 = vsyncpa [#allocation3], 0  ;;  %s1149_s0 = inlined_call_operand.vmem [shape: f32[640,8], index: 0, kind: input, shape index: {}]   ;;  %s1150_s1 = inlined_call_operand.vmem [shape: f32[32,8], index: 1, kind: input, shape index: {}]   ;;  %s1151_s2 = inlined_call_operand.vmem [shape: f32[32,1], index: 2, kind: input, shape index: {}]   ;;  %s1152_s3 = inlined_call_operand.vmem [shape: f32[16,32], index: 3, kind: input, shape index: {}]   ;;  %s1153_s4 = inlined_call_operand.vmem [shape: f32[16,1], index: 4, kind: input, shape index: {}]   ;;  %s1154_s5 = inlined_call_operand.hbm [shape: f32[16,640], index: 5, kind: output, shape index: {}]  }
   0x1   :  { %12 = vsyncpa [#allocation3 + $0x1], 0  ;;  %s949_s18 = smov 0   ;;  %s951_s19 = smov 0  }
   0x2   :  { %s953_s20 = smov 0   ;;  %s955_s21 = smov 0  }
   0x3 LB: > { %s970_s22 = sadd.s32 4294967295, %s912_s21   ;;  %s631_s23 = sadd.s32 4294967294, %s912_s21   ;;  %s912_s21 = sphi %s955_s21, %s1162_s21   ;;  %s908_s20 = sphi %s953_s20, %s1161_s20   ;;  %s904_s19 = sphi %s951_s19, %s1160_s19   ;;  %s900_s18 = sphi %s949_s18, %s1159_s18  }
   0x4   : > { %s974_s24 = sadd.s32 1, %s912_s21   ;;  %s135_s25 = sadd.s32 1, %s908_s20 }
   0x5   : > { %s132_s26 = ssub.s32 %s912_s21, %s974_s24  ;;  %p145_p0 = scmp.ne.s32.totalorder %s908_s20, %s904_s19 }
   0x6   : > { %p133_p1 = scmp.eq.s32.totalorder %s132_s26, 0  ;;  %p146_p2 = scmp.eq.s32.totalorder %s970_s22, 4 }
   0x7   : > { %p151_p3 = scmp.ne.s32.totalorder %s904_s19, %s900_s18  ;;  %p152_p4 = scmp.eq.s32.totalorder %s631_s23, 4 }
   0x8   : > { %s985_s27 = scalar_select %p133_p1, %s908_s20, %s135_s25  }
   0x9   : > { %p987_p5 = por %p146_p2, %p145_p0  ;;  %p991_p6 = por %p152_p4, %p151_p3 }
   0xa   : > { %p634_p7 = scmp.ge.s32.totalorder %s912_s21, 1  ;;  %p191_p8 = scmp.lt.s32.totalorder %s912_s21, 6 }
   0xc   : > { %p192_p9 = pnand %p634_p7, %p191_p8 }
   0xd   : > { %s636_s30 = sshll.u32 (!%p192_p9), %s970_s22, 4  ;;  %vm269_vm0 = vcmask (!%p192_p9), 64512   ;;  %v225_v0 = vld [vmem:[%s1150_s1] sm:$0xff] (!%p192_p9)  ;;  %v914_v1 = vmov (!%p192_p9), 0   ;;  %v247_v2 = vld [vmem:[%s1151_s2 + $0x10] sm:$0xff] (!%p192_p9)  ;;  %v248_v4 = vld [vmem:[%s1151_s2 + $0x18] sm:$0xff] (!%p192_p9) }
   0xe   : > { %195 = sbr.rel (%p192_p9) target bundleno = 590 (0x24e), region = 40  ;;  %p220_p10 = scmp.lt.s32.totalorder (!%p192_p9), %s636_s30, 79  ;;  %722 = vmatprep.mubr.msk.f32.mxu0 (!%p192_p9), %vm269_vm0, %v225_v0  ;;  %839 = vset.pattern.permute.xlu1 (!%p192_p9), %v914_v1  ;;  %v245_v3 = vld [vmem:[%s1151_s2] sm:$0xff] (!%p192_p9)  ;;  %v246_v5 = vld [vmem:[%s1151_s2 + $0x8] sm:$0xff] (!%p192_p9)  ;;  %vm1021_vm1 = vmpackc.low (!%p192_p9), %vm269_vm0, %vm269_vm0  ;;  %vm455_vm2 = vcmask (!%p192_p9), 261120  }
   0xf   : > { %838 = vset.pattern.permute.xlu0 (!%p192_p9), %v914_v1  ;;  %261 = vperm.xlu1 (!%p192_p9), %839, %v247_v2   ;;  %v541_v7 = vld [vmem:[%s1153_s4 + $0x8] sm:$0xff] (!%p192_p9)  ;;  %v540_v13 = vld [vmem:[%s1153_s4] sm:$0xff] (!%p192_p9)  ;;  %v227_v34 = vld [vmem:[%s1150_s1 + $0x10] sm:$0xff] (!%p192_p9)  ;;  %s216_s23 = sand.u32 (!%p192_p9), 1, %s904_s19   ;;  %s915_s11 = smov (!%p192_p9), [#allocation2]  }
  0x10   : > { %251 = vperm.xlu0 (!%p192_p9), %838, %v245_v3   ;;  %v226_v33 = vld [vmem:[%s1150_s1 + $0x8] sm:$0xff] (!%p192_p9)  ;;  %v228_v35 = vld [vmem:[%s1150_s1 + $0x18] sm:$0xff] (!%p192_p9)  ;;  %v453_v36 = vld [vmem:[%s1152_s3] sm:$0xff] (!%p192_p9)  ;;  %s854_s12 = sshll.u32 (!%p192_p9), %s915_s11, 4  ;;  %s855_s12 = int_to_ptr.vmem [resolvable:$false] %s854_s12 }
  0x11   : > { %736 = vmatprep.mubr.msk.f32.mxu1 (!%p192_p9), %vm455_vm2, %v453_v36  ;;  %s856_s13 = scalar_lea.vmem (!%p192_p9), %s855_s12, 512 }
  0x13   : > { %266 = vperm.xlu1 (!%p192_p9), %839, %v248_v4  }
  0x14   : > { %256 = vperm.xlu0 (!%p192_p9), %838, %v246_v5  }
  0x15   : > { %s1164_s30 = smov (!%p220_p10, %s636_s30), 79 }
  0x16   : > { %s637_s16 = sshll.u32 %s1164_s30, 3  ;;  %s661_s30 = sshll.u32 %s970_s22, 7 }
  0x17   : > { %s1017_s25 = scalar_lea.vmem %s1149_s0, %s637_s16  ;;  %549 = vperm.xlu1 %839, %v541_v7   ;;  %s1106_s9 = scalar_lea.hbm %s1154_s5, %s661_s30 }
  0x18   : > { %v229_v8 = vld [vmem:[%s1017_s25] sm:$0xff]  ;;  %v230_v9 = vld [vmem:[%s1017_s25 + $0x8] sm:$0xff]  ;;  %v231_v10 = vld [vmem:[%s1017_s25 + $0x10] sm:$0xff]  ;;  %544 = vperm.xlu0 %838, %v540_v13   ;;  %s1108_s22 = scalar_lea.sflag [#allocation3], %s216_s23 }
  0x19   : > { %v739_v11 = vpack.c.bf16 %v230_v9, %v229_v8  ;;  %v232_v12 = vld [vmem:[%s1017_s25 + $0x18] sm:$0xff]  ;;  %v233_v15 = vld [vmem:[%s1017_s25 + $0x20] sm:$0xff]  ;;  %v234_v16 = vld [vmem:[%s1017_s25 + $0x28] sm:$0xff] }
  0x1a   : > { %v745_v14 = vpack.c.bf16 %v232_v12, %v231_v10  ;;  %v751_v17 = vpack.c.bf16 %v234_v16, %v233_v15  ;;  %v235_v18 = vld [vmem:[%s1017_s25 + $0x30] sm:$0xff]  ;;  %v236_v19 = vld [vmem:[%s1017_s25 + $0x38] sm:$0xff]  ;;  %v237_v21 = vld [vmem:[%s1017_s25 + $0x40] sm:$0xff] }
  0x1b   : > { %741 = vmatprep.subr.msk.bf16.mxu0 %vm1021_vm1, %v739_v11  ;;  %v757_v20 = vpack.c.bf16 %v236_v19, %v235_v18  ;;  %v238_v22 = vld [vmem:[%s1017_s25 + $0x48] sm:$0xff]  ;;  %v239_v24 = vld [vmem:[%s1017_s25 + $0x50] sm:$0xff]  ;;  %v240_v25 = vld [vmem:[%s1017_s25 + $0x58] sm:$0xff] }
  0x1c   : > { %744 = vmatpush3.bf16.xpose.msk.msra.mxu0 %vm1021_vm1, %v739_v11  ;;  %v763_v23 = vpack.c.bf16 %v238_v22, %v237_v21  ;;  %v769_v26 = vpack.c.bf16 %v240_v25, %v239_v24  ;;  %v241_v27 = vld [vmem:[%s1017_s25 + $0x60] sm:$0xff]  ;;  %v242_v28 = vld [vmem:[%s1017_s25 + $0x68] sm:$0xff]  ;;  %v243_v30 = vld [vmem:[%s1017_s25 + $0x70] sm:$0xff] }
  0x1d   : > { %747 = vmatprep.subr.msk.bf16.mxu0 %vm1021_vm1, %v745_v14  ;;  %v775_v29 = vpack.c.bf16 %v242_v28, %v241_v27  ;;  %v244_v31 = vld [vmem:[%s1017_s25 + $0x78] sm:$0xff]  ;;  %v454_v19 = vld [vmem:[%s1152_s3 + $0x8] sm:$0xff]  ;;  %s635_s25 = sshll.u32 %s216_s23, 4 }
  0x1e   : > { %v781_v32 = vpack.c.bf16 %v244_v31, %v243_v30  ;;  %s218_s26 = scalar_lea.vmem [#allocation2], %s635_s25 }
  0x1f   : > { %s569_s6 = sshll.u32 %s218_s26, 4  ;;  %s1101_s6 = int_to_ptr.vmem [resolvable:$true] %s569_s6 }
  0x20   : > { %s850_s10 = scalar_lea.vmem %s1101_s6, 256  ;;  %p857_p0 = scmp.lt.s32.totalorder %s1101_s6, %s855_s12 }
  0x21   : > { %p851_p11 = scmp.ne.s32.totalorder %s1101_s6, %s850_s10  ;;  %p858_p1 = scmp.lt.s32.totalorder %s856_s13, %s850_s10 }
  0x23   : > { %p852_p12 = pnand %p851_p11, %p987_p5  ;;  %p859_p2 = por %p858_p1, %p857_p0 }
  0x24   : > { %750 = vmatpush3.bf16.xpose.msk.msra.mxu0 %vm1021_vm1, %v745_v14 }
  0x25   : > { %753 = vmatprep.subr.msk.bf16.mxu0 %vm1021_vm1, %v751_v17  ;;  %p853_p13 = pneg %p852_p12 }
  0x27   : > { %p860_p3 = pnand %p859_p2, %p853_p13 }
  0x2c   : > { %756 = vmatpush3.bf16.xpose.msk.msra.mxu0 %vm1021_vm1, %v751_v17 }
  0x2d   : > { %759 = vmatprep.subr.msk.bf16.mxu0 %vm1021_vm1, %v757_v20 }
  0x34   : > { %762 = vmatpush3.bf16.xpose.msk.msra.mxu0 %vm1021_vm1, %v757_v20 }
  0x35   : > { %765 = vmatprep.subr.msk.bf16.mxu0 %vm1021_vm1, %v763_v23 }
  0x3c   : > { %768 = vmatpush3.bf16.xpose.msk.msra.mxu0 %vm1021_vm1, %v763_v23 }
  0x3d   : > { %771 = vmatprep.subr.msk.bf16.mxu0 %vm1021_vm1, %v769_v26 }
  0x44   : > { %774 = vmatpush3.bf16.xpose.msk.msra.mxu0 %vm1021_vm1, %v769_v26 }
  0x45   : > { %777 = vmatprep.subr.msk.bf16.mxu0 %vm1021_vm1, %v775_v29 }
  0x4c   : > { %780 = vmatpush3.bf16.xpose.msk.msra.mxu0 %vm1021_vm1, %v775_v29 }
  0x4d   : > { %783 = vmatprep.subr.msk.bf16.mxu0 %vm1021_vm1, %v781_v32 }
  0x54   : > { %786 = vmatpush3.bf16.xpose.msk.msra.mxu0 %vm1021_vm1, %v781_v32 }
  0x5b   : > { %723 = vmatmul.mubr.msk.f32.vlgmr.msra.gmra.mrb[0].mxu0 %vm269_vm0, %v226_v33 }
  0x5c   : > { %725 = vmatprep.mubr.msk.f32.mxu0 %vm269_vm0, %v227_v34 }
  0x5f   : > { %726 = vmatmul.mubr.msk.f32.gmra.mrb[2].mxu0 %vm269_vm0, %v228_v35 }
  0x8e   : > { %v262_v38 = vpop.permute.xlu1 %261 }
  0x8f   : > { %v252_v37 = vpop.permute.xlu0 %251 }
  0x92   : > { %v267_v45 = vpop.permute.xlu1 %266 }
  0x93   : > { %v257_v39 = vpop.permute.xlu0 %256 }
  0x96   : > { %v550_v30 = vpop.permute.xlu1 %549 }
  0x97   : > { %v545_v32 = vpop.permute.xlu0 %544 }
 0x12e   : > { %v724_v40 = vpop.f32.mrb[0].mxu0 }
 0x12f   : > { %v402_v41 = vadd.f32 %v724_v40, %v257_v39  ;;  %v396_v42 = vpop.f32.mrb[1].mxu0 }
 0x130   : > { %v397_v43 = vadd.f32 %v396_v42, %v252_v37 }
 0x131   : > { %v416_v44 = vmul.f32 %v402_v41, %v402_v41 }
 0x132   : > { %v415_v46 = vmul.f32 %v397_v43, %v397_v43  ;;  %v727_v47 = vpop.f32.mrb[2].mxu0 }
 0x133   : > { %v420_v48 = vsub.f32 0.0, %v416_v44  ;;  %v412_v49 = vadd.f32 %v727_v47, %v267_v45  ;;  %v406_v50 = vpop.f32.mrb[3].mxu0 }
 0x134   : > { %v419_v51 = vsub.f32 0.0, %v415_v46  ;;  %v407_v52 = vadd.f32 %v406_v50, %v262_v38 }
 0x135   : > { %v418_v53 = vmul.f32 %v412_v49, %v412_v49 }
 0x136   : > { %v423_v54 = vmax.f32 %v419_v51, %v420_v48  ;;  %v417_v55 = vmul.f32 %v407_v52, %v407_v52 }
 0x137   : > { %v422_v56 = vsub.f32 0.0, %v418_v53 }
 0x138   : > { %v421_v57 = vsub.f32 0.0, %v417_v55 }
 0x13a   : > { %v424_v58 = vmax.f32 %v421_v57, %v422_v56 }
 0x13c   : > { %v425_v59 = vmax.f32 %v423_v54, %v424_v58 }
 0x13e   : > { %v426_v60 = vrot.slane %v425_v59, 4 }
 0x140   : > { %v427_v61 = vmax.f32 %v425_v59, %v426_v60 }
 0x142   : > { %v428_v62 = vrot.slane %v427_v61, 2 }
 0x144   : > { %v429_v63 = vmax.f32 %v427_v61, %v428_v62 }
 0x146   : > { %v430_v0 = vrot.slane %v429_v63, 1 }
 0x148   : > { %v431_v1 = vmax.f32 %v429_v63, %v430_v0 }
 0x14a   : > { %v434_v2 = vsub.f32 %v421_v57, %v431_v1  ;;  %v432_v3 = vsub.f32 %v419_v51, %v431_v1  ;;  %v433_v4 = vsub.f32 %v420_v48, %v431_v1  ;;  %v435_v5 = vsub.f32 %v422_v56, %v431_v1 }
 0x14c   : > { %v440_v6 = vmul.f32 1.442695, %v434_v2  ;;  %v436_v7 = vmul.f32 1.442695, %v432_v3  ;;  %v438_v8 = vmul.f32 1.442695, %v433_v4 }
 0x14d   : > { %v442_v9 = vmul.f32 1.442695, %v435_v5 }
 0x14e   : > { %840 = vpow2.f32 %v440_v6 }
 0x14f   : > { %842 = vpow2.f32 %v436_v7 }
 0x150   : > { %844 = vpow2.f32 %v438_v8 }
 0x151   : > { %846 = vpow2.f32 %v442_v9 }
 0x158   : > { %v841_v10 = vpop.eup %840 }
 0x159   : > { %v843_v11 = vpop.eup %842 }
 0x15a   : > { %v845_v12 = vpop.eup %844 }
 0x15b   : > { %v847_v13 = vpop.eup %846  ;;  %v787_v14 = vpack.c.bf16 %v845_v12, %v843_v11  ;;  %v444_v15 = vadd.f32 %v845_v12, %v843_v11 }
 0x15c   : > { %v791_v16 = vpack.c.bf16 %v847_v13, %v841_v10 }
 0x15d   : > { %788 = vmatprep.subr.bf16.mxu1 %v787_v14  ;;  %v445_v17 = vadd.f32 %v841_v10, %v444_v15 }
 0x15e   : > { %790 = vmatpush3.bf16.msra.mxu1 %v787_v14 }
 0x15f   : > { %792 = vmatprep.subr.bf16.mxu1 %v791_v16  ;;  %v446_v18 = vadd.f32 %v847_v13, %v445_v17 }
 0x161   : > { %v447_v20 = vrot.slane %v446_v18, 4 }
 0x162   : > { %794 = vmatpush3.bf16.msra.mxu1 %v791_v16 }
 0x163   : > { %v448_v21 = vadd.f32 %v447_v20, %v446_v18 }
 0x165   : > { %737 = vmatmul.mubr.msk.f32.vlgmr.msra.gmra.mrb[0].mxu1 %vm455_vm2, %v454_v19  ;;  %v449_v22 = vrot.slane %v448_v21, 2 }
 0x167   : > { %v450_v23 = vadd.f32 %v449_v22, %v448_v21 }
 0x169   : > { %v451_v24 = vrot.slane %v450_v23, 1 }
 0x16b   : > { %v452_v25 = vadd.f32 %v451_v24, %v450_v23 }
 0x16d   : > { %848 = vrcp.f32 %v452_v25 }
 0x177   : > { %v849_v26 = vpop.eup %848 }
 0x238   : > { %v738_v27 = vpop.f32.mrb[0].mxu1 }
 0x239   : > { %v539_v28 = vmul.f32 %v849_v26, %v738_v27  ;;  %v528_v29 = vpop.f32.mrb[1].mxu1 }
 0x23a   : > { %v538_v31 = vmul.f32 %v849_v26, %v528_v29 }
 0x23b   : > { %v553_v33 = vadd.f32 %v550_v30, %v539_v28 }
 0x23c   : > { %v552_v34 = vadd.f32 %v545_v32, %v538_v31 }
 0x23d   : > { %555 = vst [vmem:[%s218_s26 + $0x8] sm:$0xff] %v553_v33 }
 0x23e   : > { %554 = vst [vmem:[%s218_s26] sm:$0xff] %v552_v34 }
 0x23f   : > { %863 = shalt.err (!%p860_p3)
}
 0x240   : > { %s864_s14 = scalar_lea.hbm %s1106_s9, 256  ;;  %s868_s17 = scalar_lea.hbm %s1154_s5, 1280 }
 0x241   : > { %p865_p4 = scmp.ne.s32.totalorder %s1106_s9, %s864_s14  ;;  %p869_p9 = scmp.lt.u32.totalorder %s1106_s9, %s1154_s5 }
 0x242   : > { %p870_p10 = scmp.lt.u32.totalorder %s868_s17, %s864_s14  ;;  %p872_p12 = scmp.lt.u32.totalorder %s864_s14, %s1106_s9 }
 0x243   : > { %p866_p7 = pnand %p865_p4, %p987_p5 }
 0x244   : > { %p871_p11 = por %p870_p10, %p869_p9 }
 0x245   : > { %p867_p8 = pneg %p866_p7 }
 0x246   : > { %p873_p13 = por %p872_p12, %p871_p11 }
 0x248   : > { %p874_p0 = pnand %p873_p13, %p867_p8 }
 0x24a   : > { %877 = shalt.err (!%p874_p0)
}
 0x24b   : > { %s916_s26 = smov 128   ;;  %s917_s30 = smov 640  }
 0x24c   : > { %s918_s7 = smov 8  }
 0x24d   : > { %795 = dma.vmem_to_hbm [thread:$0]  (%p987_p5), %s1101_s6, 256, %s1106_s9, %s1108_s22, %s916_s26, %s917_s30, %s918_s7  }
 0x24e PF: > { %p801_p1 = scmp.ge.s32.totalorder %s912_s21, 2  ;;  %s584_s8 = sand.u32 1, %s900_s18  }
 0x24f   : > { %s585_s10 = scalar_lea.sflag [#allocation3], %s584_s8 }
 0x250   : > { %p798_p2 = pnand %p801_p1, %p991_p6 }
 0x252   : > { %895 = dma.done.wait (!%p798_p2), %s585_s10, 256  }
 0x253   : > { %897 = vsyncadd (!%p798_p2), %s585_s10, 4294967040  ;;  %p15_p3 = scmp.ge.s32.totalorder %s974_s24, 7   ;;  %s1159_s18 = smov %s904_s19 }
 0x254   : > { %s1160_s19 = smov %s908_s20  ;;  %s1161_s20 = smov %s985_s27 }
 0x255   : > { %s1162_s21 = smov %s974_s24  ;;  %17 = sbr.rel (!%p15_p3) target bundleno = 3 (0x3), region = 75 }
 0x25c   :  { %590 = vsyncpa [#allocation3], 1 }
 0x25d   :  { %592 = vsyncpa [#allocation3 + $0x1], 1 }

</bundles_post_ra>
